<compile_context>
chip_gen: v7x
topology: tpu7x:2x2x1
jax: 0.10.0
libtpu: 0.0.40
codegen_flags: <defaults>
</compile_context>

<pallas_src>
import jax
import jax.numpy as jnp
from jax.experimental import pallas as pl
from jax.experimental.pallas import tpu as pltpu

_LANE = 128
_TARGET_TILE_BYTES = 4 * 1024 * 1024   # ~4 MiB per buffer (per perf review)
_SMALL_SLAB_BYTES = 256 * 1024         # below this: single block, overhead tiny
_MIN_GRID_STEPS = 8                    # pipeline overlap + v7x 2-TC split
_ROW_ALIGN = 32                        # multiple of sublane packing (bf16/int8)
# 3 arrays x 2 buffers x 4 MiB = 24 MiB; 32 MiB limit is >= every chip's
# default scoped budget and well under v7x's 64 MiB physical VMEM.
_VMEM_LIMIT_BYTES = 32 * 1024 * 1024


def _residual_add_kernel(fx_ref, x_ref, o_ref):
    # Elementwise residual add on one (block_rows, 128) VMEM tile.
    o_ref[...] = fx_ref[...] + x_ref[...]


def _pick_block_rows(rows, itemsize):
    """Dtype-aware tile selection for a lane-dense (rows, 128) slab."""
    row_bytes = _LANE * itemsize
    slab_bytes = rows * row_bytes
    if slab_bytes <= _SMALL_SLAB_BYTES:
        # Tiny slab: one block.  rows may be < 8; legal because the block
        # equals the full array dim.
        return rows
    # ~4 MiB per buffer, aligned to 32 rows.
    max_rows = max(_ROW_ALIGN,
                   (_TARGET_TILE_BYTES // row_bytes) // _ROW_ALIGN * _ROW_ALIGN)
    # Keep at least _MIN_GRID_STEPS grid steps so the input fetch of step i+1
    # and the writeback of step i-1 overlap step i, and both v7x TensorCores
    # get work on the "parallel" axis.
    block = min(max_rows, pl.cdiv(rows, _MIN_GRID_STEPS))
    block = max(_ROW_ALIGN, (block // _ROW_ALIGN) * _ROW_ALIGN)
    return min(block, rows)


def _residual_add_2d(fx2, x2, *, donate_fx):
    """Residual add on a lane-dense (rows, 128) slab."""
    rows, lane = fx2.shape
    itemsize = jnp.dtype(fx2.dtype).itemsize
    block_rows = _pick_block_rows(rows, itemsize)
    grid = (pl.cdiv(rows, block_rows),)
    nbytes = rows * lane * itemsize

    return pl.pallas_call(
        _residual_add_kernel,
        out_shape=jax.ShapeDtypeStruct((rows, lane), fx2.dtype),
        grid_spec=pl.GridSpec(
            grid=grid,
            in_specs=[
                pl.BlockSpec((block_rows, lane), lambda i: (i, 0)),
                pl.BlockSpec((block_rows, lane), lambda i: (i, 0)),
            ],
            out_specs=pl.BlockSpec((block_rows, lane), lambda i: (i, 0)),
        ),
        compiler_params=pltpu.CompilerParams(
            dimension_semantics=("parallel",),
            vmem_limit_bytes=_VMEM_LIMIT_BYTES,
        ),
        # fx (input 0) is dead after the add on the Residual hot path ->
        # reuse its HBM buffer for the output (no third full-size buffer).
        input_output_aliases=({0: 0} if donate_fx else {}),
        cost_estimate=pl.CostEstimate(
            flops=rows * lane,
            transcendentals=0,
            bytes_accessed=3 * nbytes,
        ),
    )(fx2, x2)


def residual_add(fx, x, *, donate_fx=True):
    """Compute fx + x with a Pallas TPU kernel (elementwise, any shape).

    donate_fx=True aliases fx's HBM buffer to the output.  This is only a
    win (and the intended contract) when fx has no other consumers after
    this call — true inside Residual.__call__.  Pass donate_fx=False if the
    caller still needs fx (otherwise XLA inserts a defensive copy and the
    aliasing saves nothing).
    """
    assert fx.shape == x.shape, (fx.shape, x.shape)
    assert fx.dtype == x.dtype, (fx.dtype, x.dtype)
    orig_shape = x.shape
    n = x.size

    if n % _LANE == 0:
        # Fast path: free reshape to a lane-dense 2-D view, no padding.
        rows = n // _LANE
        out2 = _residual_add_2d(fx.reshape(rows, _LANE), x.reshape(rows, _LANE),
                                donate_fx=donate_fx)
        return out2.reshape(orig_shape)

    # Ragged tail: run the kernel on the lane-aligned prefix and handle the
    # < 128-element tail with a tiny jnp add (no full pad/slice round trip).
    n_main = n - (n % _LANE)
    flat_fx = fx.reshape(-1)
    flat_x = x.reshape(-1)
    tail = flat_fx[n_main:] + flat_x[n_main:]          # < 128 elements
    if n_main == 0:
        # Whole tensor is smaller than one lane: the jnp add IS the tail.
        return tail.reshape(orig_shape)
    main = _residual_add_2d(
        flat_fx[:n_main].reshape(-1, _LANE),
        flat_x[:n_main].reshape(-1, _LANE),
        donate_fx=donate_fx,
    ).reshape(-1)
    return jnp.concatenate([main, tail]).reshape(orig_shape)


class Residual:
    """JAX/Pallas equivalent of the PyTorch Residual module: fn(x) + x."""

    def __init__(self, fn):
        self.fn = fn

    def __call__(self, x, **kwargs):
        # fn(x) is dead after the add -> donate its buffer to the output.
        return residual_add(self.fn(x, **kwargs), x, donate_fx=True)


if __name__ == "__main__":
    key = jax.random.PRNGKey(0)
    kx, kw, kb = jax.random.split(key, 3)

    # Small NCHW input consistent with a conv-style wrapped fn.
    B, C, H, W = 2, 4, 16, 16
    x = jax.random.normal(kx, (B, C, H, W), dtype=jnp.float32)

    # Example wrapped fn: deterministic 1x1 conv (channel mix) + GELU, plain JAX glue.
    w = jax.random.normal(kw, (C, C), dtype=jnp.float32) * 0.1  # (C_out, C_in)
    b = jax.random.normal(kb, (C,), dtype=jnp.float32) * 0.1

    def fn(x_nchw):
        y = jnp.einsum("oc,bchw->bohw", w, x_nchw) + b[None, :, None, None]
        return jax.nn.gelu(y)

    residual = Residual(fn)

    out = jax.jit(residual)(x)
    jax.block_until_ready(out)

    # Correctness check against pure-JAX reference.
    ref = fn(x) + x
    assert out.shape == x.shape and out.dtype == x.dtype
    assert jnp.allclose(out, ref, atol=1e-5, rtol=1e-5)

    # Multi-step grid path (slab > 256 KiB -> >= 8 grid steps, pipelined).
    x_big = jax.random.normal(kx, (8, 256, 128), dtype=jnp.float32)
    out_big = jax.jit(lambda a: residual_add(a * 2.0, a))(x_big)
    jax.block_until_ready(out_big)
    assert jnp.allclose(out_big, x_big * 3.0, atol=1e-5, rtol=1e-5)

    # bf16 path (dtype-aware tiling).
    x_bf16 = jax.random.normal(kx, (4, 64, 128), dtype=jnp.bfloat16)
    out_bf16 = jax.jit(lambda a: residual_add(a * 2, a))(x_bf16)
    jax.block_until_ready(out_bf16)
    assert jnp.allclose(out_bf16.astype(jnp.float32),
                        (x_bf16 * 3).astype(jnp.float32), atol=1e-2, rtol=1e-2)

    # Ragged paths: n < 128 (pure tail) and n > 128 with a non-multiple tail.
    x_tiny = jax.random.normal(kx, (3, 5, 7), dtype=jnp.float32)   # 105 elems
    out_tiny = jax.jit(lambda a: residual_add(a * 2.0, a))(x_tiny)
    jax.block_until_ready(out_tiny)
    assert jnp.allclose(out_tiny, x_tiny * 3.0, atol=1e-6, rtol=1e-6)

    x_odd = jax.random.normal(kx, (3, 5, 17), dtype=jnp.float32)   # 255 elems
    out_odd = jax.jit(lambda a: residual_add(a * 2.0, a))(x_odd)
    jax.block_until_ready(out_odd)
    assert jnp.allclose(out_odd, x_odd * 3.0, atol=1e-6, rtol=1e-6)

    print("KERNEL_OK")
</pallas_src>

<mosaic_0001>
module attributes {stable_mosaic.version = 11 : i64} {
  func.func @_residual_add_kernel(%arg0: i32, %arg1: memref<16x128xf32, #tpu.memory_space<vmem>>, %arg2: memref<16x128xf32, #tpu.memory_space<vmem>>, %arg3: memref<16x128xf32, #tpu.memory_space<vmem>>) attributes {dimension_semantics = [#tpu.dimension_semantics<parallel>], iteration_bounds = array<i64: 1>, scalar_prefetch = 0 : i64, scratch_operands = 0 : i64, tpu.core_type = #tpu.core_type<tc>, window_params = [{transform_indices = @transform_0, window_bounds = array<i64: 16, 128>}, {transform_indices = @transform_1, window_bounds = array<i64: 16, 128>}, {transform_indices = @transform_2, window_bounds = array<i64: 16, 128>}]} {
    %c0 = arith.constant 0 : index
    %c0_0 = arith.constant 0 : index
    %0 = vector.load %arg1[%c0, %c0_0] : memref<16x128xf32, #tpu.memory_space<vmem>>, vector<16x128xf32>
    %c0_1 = arith.constant 0 : index
    %c0_2 = arith.constant 0 : index
    %1 = vector.load %arg2[%c0_1, %c0_2] : memref<16x128xf32, #tpu.memory_space<vmem>>, vector<16x128xf32>
    %2 = arith.addf %0, %1 : vector<16x128xf32>
    %c0_3 = arith.constant 0 : index
    %c0_4 = arith.constant 0 : index
    %3 = vector.load %arg3[%c0_3, %c0_4] : memref<16x128xf32, #tpu.memory_space<vmem>>, vector<16x128xf32>
    tpu.vector_store %arg3[%c0_3, %c0_4], %2 {strides = array<i32>} : memref<16x128xf32, #tpu.memory_space<vmem>>, vector<16x128xf32>,
    return
  }
  func.func @transform_0(%arg0: i32) -> (i32, i32) {
    %c0_i32 = arith.constant 0 : i32
    %c0_i32_0 = arith.constant 0 : i32
    return %arg0, %c0_i32 : i32, i32
  }
  func.func @transform_1(%arg0: i32) -> (i32, i32) {
    %c0_i32 = arith.constant 0 : i32
    %c0_i32_0 = arith.constant 0 : i32
    return %arg0, %c0_i32 : i32, i32
  }
  func.func @transform_2(%arg0: i32) -> (i32, i32) {
    %c0_i32 = arith.constant 0 : i32
    %c0_i32_0 = arith.constant 0 : i32
    return %arg0, %c0_i32 : i32, i32
  }
}

</mosaic_0001>

<bundles_post_ra>
// kernel: _unnamed_function_.1
= control target key start
LH: loop header
LB: loop body
LE: loop exit
PB: predicated region body
PF: predicated region fallthrough
CT: control target
= control target key end

     0   :  { %s56_s0 = inlined_call_operand.vmem [shape: f32[16,128], index: 0, kind: input, shape index: {}, may-alias: {0,2}]   ;;  %s57_s1 = inlined_call_operand.vmem [shape: f32[16,128], index: 1, kind: input, shape index: {}]   ;;  %s58_s2 = inlined_call_operand.vmem [shape: f32[16,128], index: 2, kind: output, shape index: {}, may-alias: {0,2}]  }
   0x1   :  { %v11_v0 = vld [vmem:[%s56_s0] sm:$0xff]  ;;  %v12_v2 = vld [vmem:[%s56_s0 + $0x8] sm:$0xff] }
   0x2   :  { %v13_v1 = vld [vmem:[%s57_s1] sm:$0xff]  ;;  %v14_v4 = vld [vmem:[%s57_s1 + $0x8] sm:$0xff] }
   0x3   :  { %v15_v3 = vadd.f32 %v13_v1, %v11_v0  ;;  %v16_v5 = vadd.f32 %v14_v4, %v12_v2 }
   0x5   :  { %17 = vst [vmem:[%s58_s2] sm:$0xff] %v15_v3  ;;  %18 = vst [vmem:[%s58_s2 + $0x8] sm:$0xff] %v16_v5 }

</bundles_post_ra>
